<compile_context>
chip_gen: v7x
topology: tpu7x:2x2x1
jax: 0.10.0
libtpu: 0.0.40
codegen_flags: <defaults>
</compile_context>

<pallas_src>
import functools
import math

import jax
import jax.numpy as jnp
from jax.experimental import pallas as pl
from jax.experimental.pallas import tpu as pltpu


def _round_up(x, m):
    return ((x + m - 1) // m) * m


def _rotation_kernel(x_ref, w1_ref, b1_ref, w2_ref, b2_ref, w3_ref, b3_ref,
                     o_ref):
    # x_ref: (C, TN) channels-first, N (lane-dense) on the last axis.
    # wX: PyTorch Conv1d layout (Cout, Cin) in the compute dtype (bf16 or f32).
    # bX: (Cout, 1), f32.
    cdt = w1_ref.dtype
    x = x_ref[...].astype(cdt)

    h1 = jnp.dot(w1_ref[...], x, preferred_element_type=jnp.float32)   # (C, TN)
    h1 = jnp.maximum(h1 + b1_ref[...], 0.0)                            # ReLU, f32

    h2 = jnp.dot(w2_ref[...], h1.astype(cdt),
                 preferred_element_type=jnp.float32)                   # (2C, TN)
    h2 = jnp.maximum(h2 + b2_ref[...], 0.0)                            # ReLU, f32

    y = jnp.dot(w3_ref[...], h2.astype(cdt),
                preferred_element_type=jnp.float32)                    # (OUT, TN)
    o_ref[...] = (y + b3_ref[...]).astype(o_ref.dtype)                 # lane-dense store


def rotation_net_forward(seed_features, params, *, tile_n=4096,
                         channels_last=True):
    """RotationNet forward.

    seed_features: (B, C, N).
    Returns (B, N, out_dim) if channels_last=True (PyTorch semantics), else
    the kernel's native (B, out_dim, N) channels-first output (no transpose).
    """
    B, C, N = seed_features.shape
    w1, b1, w2, b2, w3, b3 = (params["w1"], params["b1"], params["w2"],
                              params["b2"], params["w3"], params["b3"])
    out_dim = w3.shape[0]

    # Lane-dense tiling over N; multiple of 128, clamped to N, as large as
    # possible (step-overhead bound kernel -> bigger tiles win).
    tile_n = _round_up(min(tile_n, N), 128)
    n_tiles = pl.cdiv(N, tile_n)
    # v7x has 2 TensorCores: make sure there are >= 2 grid steps when we can.
    if B * n_tiles < 2 and N > 128:
        tile_n = _round_up(-(-N // 2), 128)
        n_tiles = pl.cdiv(N, tile_n)
    grid = (B, n_tiles)  # ragged tails handled by Pallas boundary masking

    const = lambda b, n: (0, 0)  # weights / biases: single full-resident block

    out_cn = pl.pallas_call(
        _rotation_kernel,
        out_shape=jax.ShapeDtypeStruct((B, out_dim, N), seed_features.dtype),
        grid_spec=pltpu.PrefetchScalarGridSpec(
            num_scalar_prefetch=0,
            grid=grid,
            in_specs=[
                pl.BlockSpec((pl.Squeezed(), C, tile_n),
                             lambda b, n: (b, 0, n)),                 # x tile
                pl.BlockSpec((C, C), const),                          # w1
                pl.BlockSpec((C, 1), const),                          # b1
                pl.BlockSpec((2 * C, C), const),                      # w2
                pl.BlockSpec((2 * C, 1), const),                      # b2
                pl.BlockSpec((out_dim, 2 * C), const),                # w3
                pl.BlockSpec((out_dim, 1), const),                    # b3
            ],
            out_specs=pl.BlockSpec((pl.Squeezed(), out_dim, tile_n),
                                   lambda b, n: (b, 0, n)),
        ),
        compiler_params=pltpu.CompilerParams(
            dimension_semantics=("parallel", "parallel")),
    )(seed_features, w1, b1, w2, b2, w3, b3)

    if not channels_last:
        return out_cn  # (B, out_dim, N) — lane-dense; let the consumer read it.
    # Matches PyTorch's transpose(1, 2).contiguous(); only touches the 12-wide
    # result. Keep this call inside the consumer's jit region so XLA fuses it.
    return jnp.transpose(out_cn, (0, 2, 1))


def rotation_net(seed_features, end_points, params, **kw):
    """Mirrors RotationNet.forward: fills end_points['grasp_rot_pred']."""
    end_points = dict(end_points)
    end_points["grasp_rot_pred"] = rotation_net_forward(
        seed_features, params, **kw)
    return end_points


def init_params(key, seed_feature_dim, out_dim, *, weight_dtype=jnp.bfloat16):
    """Deterministic init mimicking nn.Conv1d defaults (Kaiming-uniform bounds).

    Weights keep the PyTorch Conv1d layout (Cout, Cin) and are stored directly
    in the compute dtype (bf16 recommended) so no per-call astype is needed;
    biases are (Cout, 1) f32."""
    c = seed_feature_dim
    keys = jax.random.split(key, 6)

    def conv_init(kw_, kb_, cin, cout):
        bound = 1.0 / math.sqrt(cin)  # Conv1d kernel_size=1 fan_in = cin
        w = jax.random.uniform(kw_, (cout, cin), jnp.float32, -bound, bound)
        b = jax.random.uniform(kb_, (cout, 1), jnp.float32, -bound, bound)
        return w.astype(weight_dtype), b

    w1, b1 = conv_init(keys[0], keys[1], c, c)
    w2, b2 = conv_init(keys[2], keys[3], c, 2 * c)
    w3, b3 = conv_init(keys[4], keys[5], 2 * c, out_dim)
    return dict(w1=w1, b1=b1, w2=w2, b2=b2, w3=w3, b3=b3)


def _reference_forward(seed_features, params):
    """Plain-JAX f32 reference of the PyTorch forward (sanity check)."""
    w1 = params["w1"].astype(jnp.float32)
    w2 = params["w2"].astype(jnp.float32)
    w3 = params["w3"].astype(jnp.float32)
    x = jnp.transpose(seed_features, (0, 2, 1)).astype(jnp.float32)    # (B, N, C)
    h1 = jax.nn.relu(x @ w1.T + params["b1"][:, 0])
    h2 = jax.nn.relu(h1 @ w2.T + params["b2"][:, 0])
    return h2 @ w3.T + params["b3"][:, 0]                              # (B, N, out_dim)


if __name__ == "__main__":
    # Small shapes consistent with the module: seed_feature_dim=32, out_dim=12.
    B, C, N, OUT = 2, 32, 256, 12

    key = jax.random.PRNGKey(0)
    k_x, k_p = jax.random.split(key)
    seed_features = jax.random.normal(k_x, (B, C, N), jnp.float32)
    params = init_params(k_p, C, OUT)  # bf16 weights (recommended producer dtype)

    fwd = jax.jit(functools.partial(rotation_net_forward, tile_n=4096))
    grasp_rot_pred = fwd(seed_features, params)     # end_points['grasp_rot_pred']
    grasp_rot_pred = jax.block_until_ready(grasp_rot_pred)

    ref = _reference_forward(seed_features, params)
    assert grasp_rot_pred.shape == (B, N, OUT)
    # bf16 MXU operands with f32 accumulation -> loosened tolerance vs f32 ref.
    assert jnp.allclose(grasp_rot_pred.astype(jnp.float32), ref,
                        atol=5e-2, rtol=5e-2)

    print("KERNEL_OK")
</pallas_src>

<mosaic_0001>
module attributes {stable_mosaic.version = 11 : i64} {
  func.func @_rotation_kernel(%arg0: i32, %arg1: i32, %arg2: memref<1x32x256xf32, #tpu.memory_space<vmem>>, %arg3: memref<32x32xbf16, #tpu.memory_space<vmem>>, %arg4: memref<32x1xf32, #tpu.memory_space<vmem>>, %arg5: memref<64x32xbf16, #tpu.memory_space<vmem>>, %arg6: memref<64x1xf32, #tpu.memory_space<vmem>>, %arg7: memref<12x64xbf16, #tpu.memory_space<vmem>>, %arg8: memref<12x1xf32, #tpu.memory_space<vmem>>, %arg9: memref<1x12x256xf32, #tpu.memory_space<vmem>>) attributes {dimension_semantics = [#tpu.dimension_semantics<parallel>, #tpu.dimension_semantics<parallel>], iteration_bounds = array<i64: 2, 1>, scalar_prefetch = 0 : i64, scratch_operands = 0 : i64, tpu.core_type = #tpu.core_type<tc>, window_params = [{transform_indices = @transform_0, window_bounds = array<i64: 1, 32, 256>}, {pipeline_mode = #tpu.pipeline_mode<synchronous>, transform_indices = @transform_1, window_bounds = array<i64: 32, 32>}, {pipeline_mode = #tpu.pipeline_mode<synchronous>, transform_indices = @transform_2, window_bounds = array<i64: 32, 1>}, {pipeline_mode = #tpu.pipeline_mode<synchronous>, transform_indices = @transform_3, window_bounds = array<i64: 64, 32>}, {pipeline_mode = #tpu.pipeline_mode<synchronous>, transform_indices = @transform_4, window_bounds = array<i64: 64, 1>}, {pipeline_mode = #tpu.pipeline_mode<synchronous>, transform_indices = @transform_5, window_bounds = array<i64: 12, 64>}, {pipeline_mode = #tpu.pipeline_mode<synchronous>, transform_indices = @transform_6, window_bounds = array<i64: 12, 1>}, {transform_indices = @transform_7, window_bounds = array<i64: 1, 12, 256>}]} {
    %c0 = arith.constant 0 : index
    %c0_0 = arith.constant 0 : index
    %c0_1 = arith.constant 0 : index
    %0 = vector.load %arg2[%c0, %c0_0, %c0_1] : memref<1x32x256xf32, #tpu.memory_space<vmem>>, vector<1x32x256xf32>
    %1 = vector.shape_cast %0 : vector<1x32x256xf32> to vector<32x256xf32>
    %2 = arith.truncf %1 : vector<32x256xf32> to vector<32x256xbf16>
    %c0_2 = arith.constant 0 : index
    %c0_3 = arith.constant 0 : index
    %3 = vector.load %arg3[%c0_2, %c0_3] : memref<32x32xbf16, #tpu.memory_space<vmem>>, vector<32x32xbf16>
    %cst = arith.constant dense<0.000000e+00> : vector<32x256xf32>
    %4 = tpu.matmul %3, %2, %cst {dimension_numbers = #tpu.dot_dimension_numbers<[1], [0], [0], [1], [0, 0, 1, 1], [], []>} : vector<32x32xbf16>, vector<32x256xbf16>, vector<32x256xf32> -> vector<32x256xf32>
    %c0_4 = arith.constant 0 : index
    %c0_5 = arith.constant 0 : index
    %5 = vector.load %arg4[%c0_4, %c0_5] : memref<32x1xf32, #tpu.memory_space<vmem>>, vector<32x1xf32>
    %6 = vector.broadcast %5 : vector<32x1xf32> to vector<32x256xf32>
    %7 = arith.addf %4, %6 : vector<32x256xf32>
    %cst_6 = arith.constant 0.000000e+00 : f32
    %8 = vector.broadcast %cst_6 : f32 to vector<32x256xf32>
    %9 = arith.maximumf %7, %8 : vector<32x256xf32>
    %c0_7 = arith.constant 0 : index
    %c0_8 = arith.constant 0 : index
    %10 = vector.load %arg5[%c0_7, %c0_8] : memref<64x32xbf16, #tpu.memory_space<vmem>>, vector<64x32xbf16>
    %11 = arith.truncf %9 : vector<32x256xf32> to vector<32x256xbf16>
    %cst_9 = arith.constant dense<0.000000e+00> : vector<64x256xf32>
    %12 = tpu.matmul %10, %11, %cst_9 {dimension_numbers = #tpu.dot_dimension_numbers<[1], [0], [0], [1], [0, 0, 1, 1], [], []>} : vector<64x32xbf16>, vector<32x256xbf16>, vector<64x256xf32> -> vector<64x256xf32>
    %c0_10 = arith.constant 0 : index
    %c0_11 = arith.constant 0 : index
    %13 = vector.load %arg6[%c0_10, %c0_11] : memref<64x1xf32, #tpu.memory_space<vmem>>, vector<64x1xf32>
    %14 = vector.broadcast %13 : vector<64x1xf32> to vector<64x256xf32>
    %15 = arith.addf %12, %14 : vector<64x256xf32>
    %cst_12 = arith.constant 0.000000e+00 : f32
    %16 = vector.broadcast %cst_12 : f32 to vector<64x256xf32>
    %17 = arith.maximumf %15, %16 : vector<64x256xf32>
    %c0_13 = arith.constant 0 : index
    %c0_14 = arith.constant 0 : index
    %18 = vector.load %arg7[%c0_13, %c0_14] : memref<12x64xbf16, #tpu.memory_space<vmem>>, vector<12x64xbf16>
    %19 = arith.truncf %17 : vector<64x256xf32> to vector<64x256xbf16>
    %cst_15 = arith.constant dense<0.000000e+00> : vector<12x256xf32>
    %20 = tpu.matmul %18, %19, %cst_15 {dimension_numbers = #tpu.dot_dimension_numbers<[1], [0], [0], [1], [0, 0, 1, 1], [], []>} : vector<12x64xbf16>, vector<64x256xbf16>, vector<12x256xf32> -> vector<12x256xf32>
    %c0_16 = arith.constant 0 : index
    %c0_17 = arith.constant 0 : index
    %21 = vector.load %arg8[%c0_16, %c0_17] : memref<12x1xf32, #tpu.memory_space<vmem>>, vector<12x1xf32>
    %22 = vector.broadcast %21 : vector<12x1xf32> to vector<12x256xf32>
    %23 = arith.addf %20, %22 : vector<12x256xf32>
    %c0_18 = arith.constant 0 : index
    %c0_19 = arith.constant 0 : index
    %c0_20 = arith.constant 0 : index
    %24 = vector.load %arg9[%c0_18, %c0_19, %c0_20] : memref<1x12x256xf32, #tpu.memory_space<vmem>>, vector<1x12x256xf32>
    %25 = vector.shape_cast %24 : vector<1x12x256xf32> to vector<12x256xf32>
    %26 = vector.shape_cast %23 : vector<12x256xf32> to vector<1x12x256xf32>
    tpu.vector_store %arg9[%c0_18, %c0_19, %c0_20], %26 {strides = array<i32>} : memref<1x12x256xf32, #tpu.memory_space<vmem>>, vector<1x12x256xf32>,
    return
  }
  func.func @transform_0(%arg0: i32, %arg1: i32) -> (i32, i32, i32) {
    %c0_i32 = arith.constant 0 : i32
    %c0_i32_0 = arith.constant 0 : i32
    return %arg0, %c0_i32, %arg1 : i32, i32, i32
  }
  func.func @transform_1(%arg0: i32, %arg1: i32) -> (i32, i32) {
    %c0_i32 = arith.constant 0 : i32
    %c0_i32_0 = arith.constant 0 : i32
    %c0_i32_1 = arith.constant 0 : i32
    return %c0_i32, %c0_i32_0 : i32, i32
  }
  func.func @transform_2(%arg0: i32, %arg1: i32) -> (i32, i32) {
    %c0_i32 = arith.constant 0 : i32
    %c0_i32_0 = arith.constant 0 : i32
    %c0_i32_1 = arith.constant 0 : i32
    return %c0_i32, %c0_i32_0 : i32, i32
  }
  func.func @transform_3(%arg0: i32, %arg1: i32) -> (i32, i32) {
    %c0_i32 = arith.constant 0 : i32
    %c0_i32_0 = arith.constant 0 : i32
    %c0_i32_1 = arith.constant 0 : i32
    return %c0_i32, %c0_i32_0 : i32, i32
  }
  func.func @transform_4(%arg0: i32, %arg1: i32) -> (i32, i32) {
    %c0_i32 = arith.constant 0 : i32
    %c0_i32_0 = arith.constant 0 : i32
    %c0_i32_1 = arith.constant 0 : i32
    return %c0_i32, %c0_i32_0 : i32, i32
  }
  func.func @transform_5(%arg0: i32, %arg1: i32) -> (i32, i32) {
    %c0_i32 = arith.constant 0 : i32
    %c0_i32_0 = arith.constant 0 : i32
    %c0_i32_1 = arith.constant 0 : i32
    return %c0_i32, %c0_i32_0 : i32, i32
  }
  func.func @transform_6(%arg0: i32, %arg1: i32) -> (i32, i32) {
    %c0_i32 = arith.constant 0 : i32
    %c0_i32_0 = arith.constant 0 : i32
    %c0_i32_1 = arith.constant 0 : i32
    return %c0_i32, %c0_i32_0 : i32, i32
  }
  func.func @transform_7(%arg0: i32, %arg1: i32) -> (i32, i32, i32) {
    %c0_i32 = arith.constant 0 : i32
    %c0_i32_0 = arith.constant 0 : i32
    return %arg0, %c0_i32, %arg1 : i32, i32, i32
  }
}

</mosaic_0001>

<bundles_post_ra>
// kernel: rotation_net_forward.1
= control target key start
LH: loop header
LB: loop body
LE: loop exit
PB: predicated region body
PF: predicated region fallthrough
CT: control target
= control target key end

     0   :  { %s909_s24 = smov 0   ;;  %s911_s25 = smov 0   ;;  %s1024_s0 = inlined_call_operand.vmem [shape: f32[2,32,256], index: 0, kind: input, shape index: {}]   ;;  %s1025_s1 = inlined_call_operand.vmem [shape: bf16[32,32], index: 1, kind: input, shape index: {}]   ;;  %s1026_s2 = inlined_call_operand.vmem [shape: f32[32,1], index: 2, kind: input, shape index: {}]   ;;  %s1027_s3 = inlined_call_operand.vmem [shape: bf16[64,32], index: 3, kind: input, shape index: {}]   ;;  %s1028_s4 = inlined_call_operand.vmem [shape: f32[64,1], index: 4, kind: input, shape index: {}]   ;;  %s1029_s5 = inlined_call_operand.vmem [shape: bf16[12,64], index: 5, kind: input, shape index: {}]   ;;  %s1030_s6 = inlined_call_operand.vmem [shape: f32[12,1], index: 6, kind: input, shape index: {}]   ;;  %s1031_s7 = inlined_call_operand.vmem [shape: f32[2,12,256], index: 7, kind: output, shape index: {}]  }
   0x1   :  { %s913_s26 = smov 0  }
   0x2 LB: > { %s29_s27 = sadd.s32 1, %s862_s25  ;;  %p787_p0 = scmp.ge.s32.totalorder %s866_s26, 1  ;;  %s866_s26 = sphi %s913_s26, %s17_s26   ;;  %s862_s25 = sphi %s911_s25, %s1033_s25   ;;  %s858_s24 = sphi %s909_s24, %s1032_s24  }
   0x3   : > { %p31_p1 = scmp.ge.s32.totalorder %s29_s27, 2  ;;  %p258_p2 = scmp.lt.s32.totalorder %s866_s26, 3 }
   0x5   : > { %s1035_s27 = smov (%p31_p1, %s29_s27), 0  ;;  %p259_p3 = pnand %p787_p0, %p258_p2 }
   0x6   : > { %p299_p4 = scmp.lt.s32.totalorder (!%p259_p3), %s858_s24, 1  ;;  %v868_v0 = vmov (!%p259_p3), 0   ;;  %v335_v1 = vld [vmem:[%s1026_s2] sm:$0xff] (!%p259_p3)  ;;  %v337_v2 = vld [vmem:[%s1026_s2 + $0x10] sm:$0xff] (!%p259_p3)  ;;  %v336_v3 = vld [vmem:[%s1026_s2 + $0x8] sm:$0xff] (!%p259_p3)  ;;  %vm369_vm0 = vcmask (!%p259_p3), 261120  }
   0x7   : > { %262 = sbr.rel (%p259_p3) target bundleno = 728 (0x2d8), region = 48  ;;  %408 = vmatprep.mubr.bf16.mxu0 (!%p259_p3), %v868_v0  ;;  %835 = vset.pattern.permute.xlu0 (!%p259_p3), %v868_v0  ;;  %v338_v4 = vld [vmem:[%s1026_s2 + $0x18] sm:$0xff] (!%p259_p3)  ;;  %v449_v16 = vld [vmem:[%s1028_s4] sm:$0xff] (!%p259_p3)  ;;  %v450_v17 = vld [vmem:[%s1028_s4 + $0x8] sm:$0xff] (!%p259_p3)  ;;  %vm645_vm1 = vcmask (!%p259_p3), 523264  }
   0x8   : > { %836 = vset.pattern.permute.xlu1 (!%p259_p3), %v868_v0  ;;  %561 = vmatprep.mubr.bf16.mxu1 (!%p259_p3), %v868_v0  ;;  %v451_v19 = vld [vmem:[%s1028_s4 + $0x10] sm:$0xff] (!%p259_p3)  ;;  %v837_v20 = vld [vmem:[%s1025_s1] sm:$0xff] (!%p259_p3)   ;;  %v452_v21 = vld [vmem:[%s1028_s4 + $0x18] sm:$0xff] (!%p259_p3) }
   0x9   : > { %341 = vperm.xlu0 (!%p259_p3), %835, %v335_v1   ;;  %351 = vperm.xlu1 (!%p259_p3), %836, %v337_v2   ;;  %v453_v22 = vld [vmem:[%s1028_s4 + $0x20] sm:$0xff] (!%p259_p3)  ;;  %v454_v23 = vld [vmem:[%s1028_s4 + $0x28] sm:$0xff] (!%p259_p3)  ;;  %v455_v24 = vld [vmem:[%s1028_s4 + $0x30] sm:$0xff] (!%p259_p3) }
   0xa   : > { %v838_v25 = vld [vmem:[%s1025_s1 + $0x8] sm:$0xff] (!%p259_p3)   ;;  %v456_v26 = vld [vmem:[%s1028_s4 + $0x38] sm:$0xff] (!%p259_p3)  ;;  %v628_v27 = vld [vmem:[%s1030_s6] sm:$0xff] (!%p259_p3) }
   0xb   : > { %v629_v28 = vld [vmem:[%s1030_s6 + $0x8] sm:$0xf] (!%p259_p3)  ;;  %v839_v61 = vld [vmem:[%s1027_s3] sm:$0xff] (!%p259_p3)   ;;  %v841_v63 = vld [vmem:[%s1027_s3 + $0x10] sm:$0xff] (!%p259_p3)  }
   0xc   : > { %v840_v62 = vld [vmem:[%s1027_s3 + $0x8] sm:$0xff] (!%p259_p3)   ;;  %v842_v1 = vld [vmem:[%s1027_s3 + $0x18] sm:$0xff] (!%p259_p3)  }
   0xd   : > { %346 = vperm.xlu0 (!%p259_p3), %835, %v336_v3   ;;  %356 = vperm.xlu1 (!%p259_p3), %836, %v338_v4  }
   0xe   : > { %s1037_s24 = smov (!%p299_p4, %s858_s24), 1 }
   0xf   : > { %s808_s9 = sshll.u32 %s1037_s24, 6  ;;  %s809_s13 = sshll.u32 %s1037_s24, 5 }
  0x10   : > { %s306_s16 = scalar_lea.vmem %s1024_s0, %s808_s9 }
  0x11   : > { %v320_v5 = vld [vmem:[%s306_s16 + $0x8] sm:$0xff]  ;;  %v322_v6 = vld [vmem:[%s306_s16 + $0x18] sm:$0xff]  ;;  %v319_v7 = vld [vmem:[%s306_s16] sm:$0xff]  ;;  %459 = vperm.xlu0 %835, %v449_v16   ;;  %464 = vperm.xlu1 %836, %v450_v17  }
  0x12   : > { %v328_v8 = vpack.c.bf16 %v322_v6, %v320_v5  ;;  %v321_v9 = vld [vmem:[%s306_s16 + $0x10] sm:$0xff]  ;;  %v324_v10 = vld [vmem:[%s306_s16 + $0x28] sm:$0xff]  ;;  %v326_v11 = vld [vmem:[%s306_s16 + $0x38] sm:$0xff] }
  0x13   : > { %v327_v12 = vpack.c.bf16 %v321_v9, %v319_v7  ;;  %v330_v13 = vpack.c.bf16 %v326_v11, %v324_v10  ;;  %v323_v14 = vld [vmem:[%s306_s16 + $0x20] sm:$0xff]  ;;  %v325_v15 = vld [vmem:[%s306_s16 + $0x30] sm:$0xff]  ;;  %s316_s16 = scalar_lea.vmem %s1031_s7, %s809_s13 }
  0x14   : > { %376 = vmatprep.subr.bf16.mxu0 %v328_v8  ;;  %v329_v18 = vpack.c.bf16 %v325_v15, %v323_v14 }
  0x15   : > { %377 = vmatpush1.bf16.msra.mxu0 %v327_v12  ;;  %469 = vperm.xlu0 %835, %v451_v19  }
  0x16   : > { %378 = vmatprep.subr.bf16.mxu0 %v330_v13  ;;  %474 = vperm.xlu1 %836, %v452_v21  }
  0x19   : > { %379 = vmatpush1.bf16.msra.mxu0 %v329_v18  ;;  %479 = vperm.xlu0 %835, %v453_v22  }
  0x1a   : > { %484 = vperm.xlu1 %836, %v454_v23  }
  0x1c   : > { %794 = vmatmul.mubr.msk.bf16.vlgmr.msra.gmra.mrb[0].mxu0 %vm369_vm0, %v837_v20 }
  0x1d   : > { %418 = vmatprep.mubr.bf16.mxu0 %v868_v0  ;;  %489 = vperm.xlu0 %835, %v455_v24  }
  0x1e   : > { %494 = vperm.xlu1 %836, %v456_v26  }
  0x21   : > { %632 = vperm.xlu0 %835, %v628_v27  }
  0x22   : > { %637 = vperm.xlu1 %836, %v629_v28  }
  0x24   : > { %795 = vmatmul.mubr.msk.bf16.gmra.mrb[4].mxu0 %vm369_vm0, %v838_v25 }
  0x25   : > { %681 = vmatprep.mubr.bf16.mxu0 %v868_v0 }
  0x88   : > { %v342_v29 = vpop.permute.xlu0 %341  ;;  %v352_v38 = vpop.permute.xlu1 %351 }
  0x8c   : > { %v347_v33 = vpop.permute.xlu0 %346  ;;  %v357_v49 = vpop.permute.xlu1 %356 }
  0x90   : > { %v460_v2 = vpop.permute.xlu0 %459  ;;  %v465_v6 = vpop.permute.xlu1 %464 }
  0x94   : > { %v470_v16 = vpop.permute.xlu0 %469 }
  0x95   : > { %v475_v21 = vpop.permute.xlu1 %474 }
  0xef   : > { %v410_v30 = vpop.f32.mrb[0].mxu0 }
  0xf0   : > { %v411_v31 = vadd.f32 %v410_v30, %v342_v29  ;;  %v412_v32 = vpop.f32.mrb[1].mxu0 }
  0xf1   : > { %v413_v34 = vadd.f32 %v412_v32, %v342_v29  ;;  %v414_v35 = vpop.f32.mrb[2].mxu0  ;;  %v480_v32 = vpop.permute.xlu0 %479 }
  0xf2   : > { %v415_v36 = vadd.f32 %v414_v35, %v347_v33  ;;  %v416_v37 = vpop.f32.mrb[3].mxu0  ;;  %v429_v40 = vmax.f32 %v411_v31, 0.0 }
  0xf3   : > { %v417_v39 = vadd.f32 %v416_v37, %v347_v33  ;;  %v430_v42 = vmax.f32 %v413_v34, 0.0  ;;  %v485_v37 = vpop.permute.xlu1 %484 }
  0xf4   : > { %v431_v41 = vmax.f32 %v415_v36, 0.0 }
  0xf5   : > { %v432_v43 = vmax.f32 %v417_v39, 0.0 }
  0xf6   : > { %v445_v44 = vpack.c.bf16 %v431_v41, %v429_v40 }
  0xf7   : > { %v420_v45 = vpop.f32.mrb[4].mxu0  ;;  %v446_v46 = vpack.c.bf16 %v432_v43, %v430_v42 }
  0xf8   : > { %v421_v47 = vadd.f32 %v420_v45, %v352_v38  ;;  %v422_v48 = vpop.f32.mrb[5].mxu0 }
  0xf9   : > { %v423_v50 = vadd.f32 %v422_v48, %v352_v38  ;;  %v424_v51 = vpop.f32.mrb[6].mxu0  ;;  %529 = vmatprep.subr.bf16.mxu1 %v446_v46  ;;  %v490_v48 = vpop.permute.xlu0 %489 }
  0xfa   : > { %v425_v52 = vadd.f32 %v424_v51, %v357_v49  ;;  %v426_v53 = vpop.f32.mrb[7].mxu0  ;;  %530 = vmatpush1.bf16.msra.mxu1 %v445_v44  ;;  %v433_v55 = vmax.f32 %v421_v47, 0.0 }
  0xfb   : > { %v427_v54 = vadd.f32 %v426_v53, %v357_v49  ;;  %v434_v57 = vmax.f32 %v423_v50, 0.0  ;;  %v495_v53 = vpop.permute.xlu1 %494 }
  0xfc   : > { %v435_v56 = vmax.f32 %v425_v52, 0.0 }
  0xfd   : > { %v436_v58 = vmax.f32 %v427_v54, 0.0 }
  0xfe   : > { %v447_v59 = vpack.c.bf16 %v435_v56, %v433_v55 }
  0xff   : > { %v448_v60 = vpack.c.bf16 %v436_v58, %v434_v57 }
 0x101   : > { %531 = vmatprep.subr.bf16.mxu1 %v448_v60 }
 0x102   : > { %532 = vmatpush1.bf16.msra.mxu1 %v447_v59 }
 0x105   : > { %800 = vmatmul.mubr.msk.bf16.vlgmr.msra.gmra.mrb[0].mxu1 %vm369_vm0, %v839_v61 }
 0x106   : > { %571 = vmatprep.mubr.bf16.mxu1 %v868_v0 }
 0x10d   : > { %801 = vmatmul.mubr.msk.bf16.gmra.mrb[4].mxu1 %vm369_vm0, %v840_v62 }
 0x10e   : > { %581 = vmatprep.mubr.bf16.mxu1 %v868_v0 }
 0x115   : > { %802 = vmatmul.mubr.msk.bf16.gmra.mrb[8].mxu1 %vm369_vm0, %v841_v63 }
 0x116   : > { %591 = vmatprep.mubr.bf16.mxu1 %v868_v0 }
 0x11d   : > { %803 = vmatmul.mubr.msk.bf16.gmra.mrb[12].mxu1 %vm369_vm0, %v842_v1 }
 0x1d8   : > { %v563_v3 = vpop.f32.mrb[0].mxu1 }
 0x1d9   : > { %v564_v4 = vadd.f32 %v563_v3, %v460_v2  ;;  %v565_v5 = vpop.f32.mrb[1].mxu1  ;;  %v633_v3 = vpop.permute.xlu0 %632 }
 0x1da   : > { %v566_v7 = vadd.f32 %v565_v5, %v460_v2  ;;  %v567_v8 = vpop.f32.mrb[2].mxu1  ;;  %v843_v2 = vld [vmem:[%s1029_s5] sm:$0x3f]  }
 0x1db   : > { %v568_v9 = vadd.f32 %v567_v8, %v465_v6  ;;  %v569_v10 = vpop.f32.mrb[3].mxu1  ;;  %v602_v12 = vmax.f32 %v564_v4, 0.0 }
 0x1dc   : > { %v570_v11 = vadd.f32 %v569_v10, %v465_v6  ;;  %v603_v14 = vmax.f32 %v566_v7, 0.0  ;;  %v638_v7 = vpop.permute.xlu1 %637 }
 0x1dd   : > { %v604_v13 = vmax.f32 %v568_v9, 0.0 }
 0x1de   : > { %v605_v0 = vmax.f32 %v570_v11, 0.0 }
 0x1df   : > { %v620_v15 = vpack.c.bf16 %v604_v13, %v602_v12 }
 0x1e0   : > { %v621_v17 = vpack.c.bf16 %v605_v0, %v603_v14  ;;  %v573_v18 = vpop.f32.mrb[4].mxu1 }
 0x1e1   : > { %v574_v19 = vadd.f32 %v573_v18, %v470_v16  ;;  %v575_v20 = vpop.f32.mrb[5].mxu1 }
 0x1e2   : > { %v576_v22 = vadd.f32 %v575_v20, %v470_v16  ;;  %v577_v23 = vpop.f32.mrb[6].mxu1  ;;  %649 = vmatprep.subr.bf16.mxu0 %v621_v17 }
 0x1e3   : > { %v578_v24 = vadd.f32 %v577_v23, %v475_v21  ;;  %v579_v25 = vpop.f32.mrb[7].mxu1  ;;  %650 = vmatpush1.bf16.msra.mxu0 %v620_v15  ;;  %v606_v27 = vmax.f32 %v574_v19, 0.0 }
 0x1e4   : > { %v580_v26 = vadd.f32 %v579_v25, %v475_v21  ;;  %v607_v29 = vmax.f32 %v576_v22, 0.0 }
 0x1e5   : > { %v608_v28 = vmax.f32 %v578_v24, 0.0 }
 0x1e6   : > { %v609_v30 = vmax.f32 %v580_v26, 0.0 }
 0x1e7   : > { %v622_v31 = vpack.c.bf16 %v608_v28, %v606_v27 }
 0x1e8   : > { %v623_v33 = vpack.c.bf16 %v609_v30, %v607_v29  ;;  %v583_v34 = vpop.f32.mrb[8].mxu1 }
 0x1e9   : > { %v584_v35 = vadd.f32 %v583_v34, %v480_v32  ;;  %v585_v36 = vpop.f32.mrb[9].mxu1 }
 0x1ea   : > { %v586_v38 = vadd.f32 %v585_v36, %v480_v32  ;;  %v587_v39 = vpop.f32.mrb[10].mxu1  ;;  %651 = vmatprep.subr.bf16.mxu0 %v623_v33 }
 0x1eb   : > { %v588_v40 = vadd.f32 %v587_v39, %v485_v37  ;;  %v589_v41 = vpop.f32.mrb[11].mxu1  ;;  %652 = vmatpush1.bf16.msra.mxu0 %v622_v31  ;;  %v610_v43 = vmax.f32 %v584_v35, 0.0 }
 0x1ec   : > { %v590_v42 = vadd.f32 %v589_v41, %v485_v37  ;;  %v611_v45 = vmax.f32 %v586_v38, 0.0 }
 0x1ed   : > { %v612_v44 = vmax.f32 %v588_v40, 0.0 }
 0x1ee   : > { %v613_v46 = vmax.f32 %v590_v42, 0.0 }
 0x1ef   : > { %v624_v47 = vpack.c.bf16 %v612_v44, %v610_v43 }
 0x1f0   : > { %v625_v49 = vpack.c.bf16 %v613_v46, %v611_v45  ;;  %v593_v50 = vpop.f32.mrb[12].mxu1 }
 0x1f1   : > { %v594_v51 = vadd.f32 %v593_v50, %v490_v48  ;;  %v595_v52 = vpop.f32.mrb[13].mxu1 }
 0x1f2   : > { %v596_v54 = vadd.f32 %v595_v52, %v490_v48  ;;  %v597_v55 = vpop.f32.mrb[14].mxu1  ;;  %653 = vmatprep.subr.bf16.mxu0 %v625_v49 }
 0x1f3   : > { %v598_v56 = vadd.f32 %v597_v55, %v495_v53  ;;  %v599_v57 = vpop.f32.mrb[15].mxu1  ;;  %654 = vmatpush1.bf16.msra.mxu0 %v624_v47  ;;  %v614_v59 = vmax.f32 %v594_v51, 0.0 }
 0x1f4   : > { %v600_v58 = vadd.f32 %v599_v57, %v495_v53  ;;  %v615_v61 = vmax.f32 %v596_v54, 0.0 }
 0x1f5   : > { %v616_v60 = vmax.f32 %v598_v56, 0.0 }
 0x1f6   : > { %v617_v62 = vmax.f32 %v600_v58, 0.0 }
 0x1f7   : > { %v626_v63 = vpack.c.bf16 %v616_v60, %v614_v59 }
 0x1f8   : > { %v627_v1 = vpack.c.bf16 %v617_v62, %v615_v61 }
 0x1fa   : > { %655 = vmatprep.subr.bf16.mxu0 %v627_v1 }
 0x1fb   : > { %656 = vmatpush1.bf16.msra.mxu0 %v626_v63 }
 0x1fe   : > { %805 = vmatmul.mubr.msk.bf16.vlgmr.msra.gmra.mrb[8].mxu0 %vm645_vm1, %v843_v2 }
 0x2d1   : > { %v683_v4 = vpop.f32.mrb[8].mxu0 }
 0x2d2   : > { %v684_v5 = vadd.f32 %v683_v4, %v633_v3  ;;  %v685_v6 = vpop.f32.mrb[9].mxu0 }
 0x2d3   : > { %v686_v8 = vadd.f32 %v685_v6, %v633_v3  ;;  %v687_v9 = vpop.f32.mrb[10].mxu0 }
 0x2d4   : > { %692 = vst [vmem:[%s316_s16] sm:$0xff] %v684_v5  ;;  %v688_v10 = vadd.f32 %v687_v9, %v638_v7  ;;  %v689_v11 = vpop.f32.mrb[11].mxu0 }
 0x2d5   : > { %693 = vst [vmem:[%s316_s16 + $0x8] sm:$0xff] %v686_v8  ;;  %v690_v12 = vadd.f32 %v689_v11, %v638_v7 }
 0x2d6   : > { %694 = vst [vmem:[%s316_s16 + $0x10] sm:$0xf] %v688_v10 }
 0x2d7   : > { %695 = vst [vmem:[%s316_s16 + $0x18] sm:$0xf] %v690_v12 }
 0x2d8 PF: > { %s17_s26 = sadd.s32 1, %s866_s26   ;;  %s1032_s24 = smov %s862_s25 }
 0x2d9   : > { %p14_p5 = scmp.ge.s32.totalorder %s17_s26, 4   ;;  %s1033_s25 = smov %s1035_s27 }
 0x2db   :  { %16 = sbr.rel (!%p14_p5) target bundleno = 2 (0x2), region = 78 }

</bundles_post_ra>
